<compile_context>
chip_gen: v6e
topology: v6e:2x2x1
jax: 0.10.0
libtpu: 0.0.40
codegen_flags: <defaults>
</compile_context>

<pallas_src>
import functools

import jax
import jax.numpy as jnp
from jax.experimental import pallas as pl
from jax.experimental.pallas import tpu as pltpu


def _round_up(x, m):
    return (x + m - 1) // m * m


def _im2col(x, kh, kw, stride, padding, dilation):
    """x: (N, C, H, W) -> patches (N*OH*OW, C*KH*KW) matching PyTorch weight order."""
    n, c, h, w = x.shape
    xp = jnp.pad(x, ((0, 0), (0, 0), (padding, padding), (padding, padding)))
    hp, wp = h + 2 * padding, w + 2 * padding
    oh = (hp - (dilation * (kh - 1) + 1)) // stride + 1
    ow = (wp - (dilation * (kw - 1) + 1)) // stride + 1
    cols = []
    for i in range(kh):
        for j in range(kw):
            patch = xp[:, :,
                       i * dilation: i * dilation + stride * (oh - 1) + 1: stride,
                       j * dilation: j * dilation + stride * (ow - 1) + 1: stride]
            cols.append(patch)                      # (N, C, OH, OW)
    cols = jnp.stack(cols, axis=2)                  # (N, C, KH*KW, OH, OW)
    cols = cols.reshape(n, c * kh * kw, oh, ow)     # index = c*(KH*KW) + i*KW + j
    cols = cols.transpose(0, 2, 3, 1).reshape(n * oh * ow, c * kh * kw)
    return cols, oh, ow


def _conv_stats_kernel(p_ref, w_ref, y_ref, stats_ref):
    """Tiled matmul accumulating directly into the resident f32 output block;
    at the last K step also emits per-tile per-channel sum (row 0) and
    sum-of-squares (row 1) partials."""
    k = pl.program_id(2)

    @pl.when(k == 0)
    def _init():
        y_ref[...] = jnp.zeros_like(y_ref)

    y_ref[...] += jnp.dot(p_ref[...], w_ref[...],
                          preferred_element_type=jnp.float32)

    @pl.when(k == pl.num_programs(2) - 1)
    def _finalize():
        y = y_ref[...]
        s = jnp.sum(y, axis=0, keepdims=True)        # (1, tn)
        ss = jnp.sum(y * y, axis=0, keepdims=True)   # (1, tn)
        row = jax.lax.broadcasted_iota(jnp.int32, stats_ref.shape, 0)
        stats_ref[...] = jnp.where(row == 0, s, jnp.where(row == 1, ss, 0.0))


def _scale_shift_relu_kernel(y_ref, scale_ref, shift_ref, o_ref, *, apply_relu):
    y = y_ref[...] * scale_ref[...] + shift_ref[...]
    if apply_relu:
        y = jnp.maximum(y, 0.0)
    o_ref[...] = y


@functools.partial(
    jax.jit,
    static_argnames=("stride", "padding", "dilation", "groups", "relu", "bn",
                     "eps", "mxu_dtype", "tm", "tk", "tn"))
def basic_conv_forward(x, weight, gamma=None, beta=None, *, stride=1, padding=0,
                       dilation=1, groups=1, relu=True, bn=True, eps=1e-5,
                       mxu_dtype=jnp.bfloat16, tm=256, tk=256, tn=128):
    """Forward of BasicConv. x: (N, C, H, W) f32, weight: (OC, C, KH, KW) f32."""
    assert groups == 1, "groups > 1 not supported"
    n, c, h, w = x.shape
    oc, cin, kh, kw = weight.shape
    assert cin == c

    patches, oh, ow = _im2col(x, kh, kw, stride, padding, dilation)   # (M, K) f32
    wmat = weight.reshape(oc, c * kh * kw).T                          # (K, OC)
    m, k = patches.shape

    # Clamp tiles to the (lane/sublane aligned) problem size -> no wasted MXU work
    # on tiny K / OC, and the padded im2col stays as small as possible.
    tm = min(tm, _round_up(m, 128))
    tk = min(tk, _round_up(k, 128))
    tn = min(tn, _round_up(oc, 128))

    m_pad = _round_up(m, tm)
    k_pad = _round_up(k, tk)
    oc_pad = _round_up(oc, tn)
    mt, nt, kt = m_pad // tm, oc_pad // tn, k_pad // tk

    p = jnp.pad(patches.astype(mxu_dtype), ((0, m_pad - m), (0, k_pad - k)))
    wm = jnp.pad(wmat.astype(mxu_dtype), ((0, k_pad - k), (0, oc_pad - oc)))

    itemsize = jnp.dtype(mxu_dtype).itemsize
    cost = pl.CostEstimate(
        flops=2 * m_pad * k_pad * oc_pad,
        transcendentals=0,
        bytes_accessed=(m_pad * k_pad * itemsize + k_pad * oc_pad * itemsize
                        + m_pad * oc_pad * 4))

    # Phase 1: conv matmul (bf16 in / f32 acc into the resident output block)
    # + per-tile BN partial stats.
    y, stats = pl.pallas_call(
        _conv_stats_kernel,
        out_shape=(jax.ShapeDtypeStruct((m_pad, oc_pad), jnp.float32),
                   jax.ShapeDtypeStruct((mt * 8, oc_pad), jnp.float32)),
        grid_spec=pltpu.PrefetchScalarGridSpec(
            num_scalar_prefetch=0,
            grid=(mt, nt, kt),
            in_specs=[pl.BlockSpec((tm, tk), lambda i, j, kk: (i, kk)),
                      pl.BlockSpec((tk, tn), lambda i, j, kk: (kk, j))],
            out_specs=[pl.BlockSpec((tm, tn), lambda i, j, kk: (i, j)),
                       pl.BlockSpec((8, tn), lambda i, j, kk: (i, j))]),
        compiler_params=pltpu.CompilerParams(
            dimension_semantics=("parallel", "parallel", "arbitrary"),
            vmem_limit_bytes=32 * 1024 * 1024),
        cost_estimate=cost,
    )(p, wm)

    # Tiny XLA reduction: partial sums -> per-channel scale/shift (f32).
    if bn:
        stats = stats.reshape(mt, 8, oc_pad)
        ch_sum = jnp.sum(stats[:, 0, :], axis=0)                 # (oc_pad,)
        ch_sumsq = jnp.sum(stats[:, 1, :], axis=0)
        mean = ch_sum / m                                        # real M, not padded
        var = jnp.maximum(ch_sumsq / m - mean * mean, 0.0)       # biased variance
        inv = jax.lax.rsqrt(var + eps)
        g = jnp.pad(gamma.astype(jnp.float32), (0, oc_pad - oc), constant_values=1.0)
        b = jnp.pad(beta.astype(jnp.float32), (0, oc_pad - oc))
        scale = (inv * g).reshape(1, oc_pad)
        shift = (b - mean * inv * g).reshape(1, oc_pad)
    else:
        scale = jnp.ones((1, oc_pad), jnp.float32)
        shift = jnp.zeros((1, oc_pad), jnp.float32)

    # Phase 2: lane-dense, M-tiled normalize (+ReLU), in place over the conv
    # intermediate (input_output_aliases reuses y's HBM buffer).
    out = pl.pallas_call(
        functools.partial(_scale_shift_relu_kernel, apply_relu=relu),
        out_shape=jax.ShapeDtypeStruct((m_pad, oc_pad), jnp.float32),
        grid_spec=pltpu.PrefetchScalarGridSpec(
            num_scalar_prefetch=0,
            grid=(mt,),
            in_specs=[pl.BlockSpec((tm, oc_pad), lambda i: (i, 0)),
                      pl.BlockSpec((1, oc_pad), lambda i: (0, 0)),
                      pl.BlockSpec((1, oc_pad), lambda i: (0, 0))],
            out_specs=pl.BlockSpec((tm, oc_pad), lambda i: (i, 0))),
        compiler_params=pltpu.CompilerParams(
            dimension_semantics=("parallel",),
            vmem_limit_bytes=32 * 1024 * 1024),
        input_output_aliases={0: 0},
    )(y, scale, shift)

    # (M_pad, OC_pad) -> (N, OC, OH, OW)  (NCHW, matching the PyTorch module).
    return out[:m, :oc].reshape(n, oh, ow, oc).transpose(0, 3, 1, 2)


def _reference(x, weight, gamma, beta, stride, padding, dilation,
               conv_dtype=jnp.float32):
    y = jax.lax.conv_general_dilated(
        x.astype(conv_dtype), weight.astype(conv_dtype),
        window_strides=(stride, stride),
        padding=[(padding, padding), (padding, padding)],
        rhs_dilation=(dilation, dilation),
        dimension_numbers=("NCHW", "OIHW", "NCHW"),
        preferred_element_type=jnp.float32)
    mean = jnp.mean(y, axis=(0, 2, 3), keepdims=True)
    var = jnp.mean((y - mean) ** 2, axis=(0, 2, 3), keepdims=True)
    yhat = (y - mean) * jax.lax.rsqrt(var + 1e-5)
    yhat = yhat * gamma.reshape(1, -1, 1, 1) + beta.reshape(1, -1, 1, 1)
    return jnp.maximum(yhat, 0.0)


if __name__ == "__main__":
    # BasicConv(in_planes=4, out_planes=8, kernel_size=3, stride=1, padding=1)
    in_planes, out_planes, ksize, stride, padding, dilation = 4, 8, 3, 1, 1, 1

    key = jax.random.PRNGKey(0)
    kx, kw_, kg, kb = jax.random.split(key, 4)
    x = jax.random.normal(kx, (2, in_planes, 16, 16), dtype=jnp.float32)
    weight = jax.random.normal(kw_, (out_planes, in_planes, ksize, ksize),
                               dtype=jnp.float32) * 0.1
    gamma = 1.0 + 0.1 * jax.random.normal(kg, (out_planes,), dtype=jnp.float32)
    beta = 0.1 * jax.random.normal(kb, (out_planes,), dtype=jnp.float32)

    out = basic_conv_forward(x, weight, gamma, beta, stride=stride,
                             padding=padding, dilation=dilation)
    out = jax.block_until_ready(out)
    assert out.shape == (2, out_planes, 16, 16)

    # Tight check against a reference that uses the same bf16 conv inputs
    # (f32 accumulation), i.e. the kernel's own arithmetic.
    ref_bf16 = _reference(x, weight, gamma, beta, stride, padding, dilation,
                          conv_dtype=jnp.bfloat16)
    assert jnp.allclose(out, ref_bf16, atol=2e-3, rtol=2e-3), \
        "mismatch vs bf16-matched reference"

    # Looser sanity check against the full-f32 PyTorch-module semantics
    # (difference is only the bf16 MXU input quantization).
    ref_f32 = _reference(x, weight, gamma, beta, stride, padding, dilation,
                         conv_dtype=jnp.float32)
    assert jnp.allclose(out, ref_f32, atol=6e-2, rtol=6e-2), \
        "mismatch vs f32 reference"

    print("KERNEL_OK")
</pallas_src>

<mosaic_0001>
module attributes {stable_mosaic.version = 11 : i64} {
  func.func @_conv_stats_kernel(%arg0: i32, %arg1: i32, %arg2: i32, %arg3: memref<256x128xbf16, #tpu.memory_space<vmem>>, %arg4: memref<128x128xbf16, #tpu.memory_space<vmem>>, %arg5: memref<256x128xf32, #tpu.memory_space<vmem>>, %arg6: memref<8x128xf32, #tpu.memory_space<vmem>>) attributes {dimension_semantics = [#tpu.dimension_semantics<parallel>, #tpu.dimension_semantics<parallel>, #tpu.dimension_semantics<arbitrary>], iteration_bounds = array<i64: 2, 1, 1>, scalar_prefetch = 0 : i64, scratch_operands = 0 : i64, tpu.core_type = #tpu.core_type<tc>, window_params = [{transform_indices = @transform_0, window_bounds = array<i64: 256, 128>}, {transform_indices = @transform_1, window_bounds = array<i64: 128, 128>}, {transform_indices = @transform_2, window_bounds = array<i64: 256, 128>}, {transform_indices = @transform_3, window_bounds = array<i64: 8, 128>}]} {
    %c0_i32 = arith.constant 0 : i32
    %0 = arith.cmpi eq, %arg2, %c0_i32 : i32
    %1 = arith.extui %0 : i1 to i32
    %c0_i32_0 = arith.constant 0 : i32
    %2 = arith.cmpi ne, %1, %c0_i32_0 : i32
    scf.if %2 {
      %cst_10 = arith.constant 0.000000e+00 : f32
      %12 = vector.broadcast %cst_10 : f32 to vector<256x128xf32>
      %c0_11 = arith.constant 0 : index
      %c0_12 = arith.constant 0 : index
      %13 = vector.load %arg5[%c0_11, %c0_12] : memref<256x128xf32, #tpu.memory_space<vmem>>, vector<256x128xf32>
      tpu.vector_store %arg5[%c0_11, %c0_12], %12 {strides = array<i32>} : memref<256x128xf32, #tpu.memory_space<vmem>>, vector<256x128xf32>,
    } else {
    }
    %c0 = arith.constant 0 : index
    %c0_1 = arith.constant 0 : index
    %3 = vector.load %arg5[%c0, %c0_1] : memref<256x128xf32, #tpu.memory_space<vmem>>, vector<256x128xf32>
    %c0_2 = arith.constant 0 : index
    %c0_3 = arith.constant 0 : index
    %4 = vector.load %arg3[%c0_2, %c0_3] : memref<256x128xbf16, #tpu.memory_space<vmem>>, vector<256x128xbf16>
    %c0_4 = arith.constant 0 : index
    %c0_5 = arith.constant 0 : index
    %5 = vector.load %arg4[%c0_4, %c0_5] : memref<128x128xbf16, #tpu.memory_space<vmem>>, vector<128x128xbf16>
    %cst = arith.constant dense<0.000000e+00> : vector<256x128xf32>
    %6 = tpu.matmul %4, %5, %cst {dimension_numbers = #tpu.dot_dimension_numbers<[1], [0], [0], [1], [0, 0, 1, 1], [], []>} : vector<256x128xbf16>, vector<128x128xbf16>, vector<256x128xf32> -> vector<256x128xf32>
    %7 = arith.addf %3, %6 : vector<256x128xf32>
    %c0_6 = arith.constant 0 : index
    %c0_7 = arith.constant 0 : index
    %8 = vector.load %arg5[%c0_6, %c0_7] : memref<256x128xf32, #tpu.memory_space<vmem>>, vector<256x128xf32>
    tpu.vector_store %arg5[%c0_6, %c0_7], %7 {strides = array<i32>} : memref<256x128xf32, #tpu.memory_space<vmem>>, vector<256x128xf32>,
    %c0_i32_8 = arith.constant 0 : i32
    %9 = arith.cmpi eq, %arg2, %c0_i32_8 : i32
    %10 = arith.extui %9 : i1 to i32
    %c0_i32_9 = arith.constant 0 : i32
    %11 = arith.cmpi ne, %10, %c0_i32_9 : i32
    scf.if %11 {
      %c0_10 = arith.constant 0 : index
      %c0_11 = arith.constant 0 : index
      %12 = vector.load %arg5[%c0_10, %c0_11] : memref<256x128xf32, #tpu.memory_space<vmem>>, vector<256x128xf32>
      %cst_12 = arith.constant dense<0.000000e+00> : vector<128xf32>
      %13 = vector.multi_reduction <add>, %12, %cst_12 [0] : vector<256x128xf32> to vector<128xf32>
      %14 = vector.shape_cast %13 : vector<128xf32> to vector<1x128xf32>
      %15 = arith.mulf %12, %12 : vector<256x128xf32>
      %cst_13 = arith.constant dense<0.000000e+00> : vector<128xf32>
      %16 = vector.multi_reduction <add>, %15, %cst_13 [0] : vector<256x128xf32> to vector<128xf32>
      %17 = vector.shape_cast %16 : vector<128xf32> to vector<1x128xf32>
      %18 = tpu.iota {dimensions = array<i32: 0>} : vector<8x128xi32>
      %c0_i32_14 = arith.constant 0 : i32
      %19 = vector.broadcast %c0_i32_14 : i32 to vector<8x128xi32>
      %20 = arith.cmpi eq, %18, %19 : vector<8x128xi32>
      %c1_i32 = arith.constant 1 : i32
      %21 = vector.broadcast %c1_i32 : i32 to vector<8x128xi32>
      %22 = arith.cmpi eq, %18, %21 : vector<8x128xi32>
      %cst_15 = arith.constant 0.000000e+00 : f32
      %23 = vector.shape_cast %17 : vector<1x128xf32> to vector<1x128xf32>
      %24 = vector.broadcast %23 : vector<1x128xf32> to vector<8x128xf32>
      %25 = vector.broadcast %cst_15 : f32 to vector<8x128xf32>
      %26 = arith.select %22, %24, %25 : vector<8x128xi1>, vector<8x128xf32>
      %27 = vector.shape_cast %14 : vector<1x128xf32> to vector<1x128xf32>
      %28 = vector.broadcast %27 : vector<1x128xf32> to vector<8x128xf32>
      %29 = arith.select %20, %28, %26 : vector<8x128xi1>, vector<8x128xf32>
      %c0_16 = arith.constant 0 : index
      %c0_17 = arith.constant 0 : index
      %30 = vector.load %arg6[%c0_16, %c0_17] : memref<8x128xf32, #tpu.memory_space<vmem>>, vector<8x128xf32>
      tpu.vector_store %arg6[%c0_16, %c0_17], %29 {strides = array<i32>} : memref<8x128xf32, #tpu.memory_space<vmem>>, vector<8x128xf32>,
    } else {
    }
    return
  }
  func.func @transform_0(%arg0: i32, %arg1: i32, %arg2: i32) -> (i32, i32) {
    %c0_i32 = arith.constant 0 : i32
    return %arg0, %arg2 : i32, i32
  }
  func.func @transform_1(%arg0: i32, %arg1: i32, %arg2: i32) -> (i32, i32) {
    %c0_i32 = arith.constant 0 : i32
    return %arg2, %arg1 : i32, i32
  }
  func.func @transform_2(%arg0: i32, %arg1: i32, %arg2: i32) -> (i32, i32) {
    %c0_i32 = arith.constant 0 : i32
    return %arg0, %arg1 : i32, i32
  }
  func.func @transform_3(%arg0: i32, %arg1: i32, %arg2: i32) -> (i32, i32) {
    %c0_i32 = arith.constant 0 : i32
    return %arg0, %arg1 : i32, i32
  }
}

module attributes {stable_mosaic.version = 11 : i64} {
  func.func @_scale_shift_relu_kernel(%arg0: i32, %arg1: memref<256x128xf32, #tpu.memory_space<vmem>>, %arg2: memref<1x128xf32, #tpu.memory_space<vmem>>, %arg3: memref<1x128xf32, #tpu.memory_space<vmem>>, %arg4: memref<256x128xf32, #tpu.memory_space<vmem>>) attributes {dimension_semantics = [#tpu.dimension_semantics<parallel>], iteration_bounds = array<i64: 2>, scalar_prefetch = 0 : i64, scratch_operands = 0 : i64, tpu.core_type = #tpu.core_type<tc>, window_params = [{transform_indices = @transform_0, window_bounds = array<i64: 256, 128>}, {pipeline_mode = #tpu.pipeline_mode<synchronous>, transform_indices = @transform_1, window_bounds = array<i64: 1, 128>}, {pipeline_mode = #tpu.pipeline_mode<synchronous>, transform_indices = @transform_2, window_bounds = array<i64: 1, 128>}, {transform_indices = @transform_3, window_bounds = array<i64: 256, 128>}]} {
    %c0 = arith.constant 0 : index
    %c0_0 = arith.constant 0 : index
    %0 = vector.load %arg1[%c0, %c0_0] : memref<256x128xf32, #tpu.memory_space<vmem>>, vector<256x128xf32>
    %c0_1 = arith.constant 0 : index
    %c0_2 = arith.constant 0 : index
    %1 = vector.load %arg2[%c0_1, %c0_2] : memref<1x128xf32, #tpu.memory_space<vmem>>, vector<1x128xf32>
    %2 = vector.broadcast %1 : vector<1x128xf32> to vector<256x128xf32>
    %3 = arith.mulf %0, %2 : vector<256x128xf32>
    %c0_3 = arith.constant 0 : index
    %c0_4 = arith.constant 0 : index
    %4 = vector.load %arg3[%c0_3, %c0_4] : memref<1x128xf32, #tpu.memory_space<vmem>>, vector<1x128xf32>
    %5 = vector.broadcast %4 : vector<1x128xf32> to vector<256x128xf32>
    %6 = arith.addf %3, %5 : vector<256x128xf32>
    %cst = arith.constant 0.000000e+00 : f32
    %7 = vector.broadcast %cst : f32 to vector<256x128xf32>
    %8 = arith.maximumf %6, %7 : vector<256x128xf32>
    %c0_5 = arith.constant 0 : index
    %c0_6 = arith.constant 0 : index
    %9 = vector.load %arg4[%c0_5, %c0_6] : memref<256x128xf32, #tpu.memory_space<vmem>>, vector<256x128xf32>
    tpu.vector_store %arg4[%c0_5, %c0_6], %8 {strides = array<i32>} : memref<256x128xf32, #tpu.memory_space<vmem>>, vector<256x128xf32>,
    return
  }
  func.func @transform_0(%arg0: i32) -> (i32, i32) {
    %c0_i32 = arith.constant 0 : i32
    %c0_i32_0 = arith.constant 0 : i32
    return %arg0, %c0_i32 : i32, i32
  }
  func.func @transform_1(%arg0: i32) -> (i32, i32) {
    %c0_i32 = arith.constant 0 : i32
    %c0_i32_0 = arith.constant 0 : i32
    %c0_i32_1 = arith.constant 0 : i32
    return %c0_i32, %c0_i32_0 : i32, i32
  }
  func.func @transform_2(%arg0: i32) -> (i32, i32) {
    %c0_i32 = arith.constant 0 : i32
    %c0_i32_0 = arith.constant 0 : i32
    %c0_i32_1 = arith.constant 0 : i32
    return %c0_i32, %c0_i32_0 : i32, i32
  }
  func.func @transform_3(%arg0: i32) -> (i32, i32) {
    %c0_i32 = arith.constant 0 : i32
    %c0_i32_0 = arith.constant 0 : i32
    return %arg0, %c0_i32 : i32, i32
  }
}

</mosaic_0001>

<bundles_post_ra>
// kernel: basic_conv_forward.3
= control target key start
LH: loop header
LB: loop body
LE: loop exit
PB: predicated region body
PF: predicated region fallthrough
CT: control target
= control target key end

     0   :  { %s453_s12 = smov 0   ;;  %s643_s0 = inlined_call_operand.vmem [shape: f32[512,128], index: 0, kind: input, shape index: {}, may-alias: {0,3}]   ;;  %s644_s1 = inlined_call_operand.vmem [shape: f32[1,128], index: 1, kind: input, shape index: {}]   ;;  %s645_s2 = inlined_call_operand.vmem [shape: f32[1,128], index: 2, kind: input, shape index: {}]   ;;  %s646_s3 = inlined_call_operand.vmem [shape: f32[512,128], index: 3, kind: output, shape index: {}, may-alias: {0,3}]  }
   0x1 LB: > { %s404_s13 = sadd.s32 4294967295, %s431_s12   ;;  %p408_p0 = scmp.ge.s32.totalorder %s431_s12, 1  ;;  %s431_s12 = sphi %s453_s12, %s13_s12  }
   0x2   : > { %p138_p1 = scmp.lt.s32.totalorder %s431_s12, 3 }
   0x4   : > { %p139_p2 = pnand %p408_p0, %p138_p1 }
   0x5   : > { %s409_s14 = sshll.u32 (!%p139_p2), %s404_s13, 5 }
   0x6   : > { %142 = sbr.rel (%p139_p2) target bundleno = 44 (0x2c), region = 32  ;;  %p163_p3 = scmp.lt.s32.totalorder (!%p139_p2), %s409_s14, 63 }
   0xb   : > { %s648_s14 = smov (!%p163_p3, %s409_s14), 63  ;;  %v467_v0 = vld [vmem:[%s644_s1] ss:$0 sm:$0xff] }
   0xc   : > { %s410_s15 = sshll.u32 %s648_s14, 3  ;;  %v479_v1 = vld [vmem:[%s645_s2] ss:$0 sm:$0xff] }
   0xd   : > { %s474_s20 = scalar_lea.vmem %s643_s0, %s410_s15  ;;  %s521_s25 = scalar_lea.vmem %s646_s3, %s410_s15 }
   0xe   : > { %v174_v2 = vld [vmem:[%s474_s20] sm:$0xff]  ;;  %v175_v3 = vld [vmem:[%s474_s20 + $0x8] sm:$0xff]  ;;  %v176_v4 = vld [vmem:[%s474_s20 + $0x10] sm:$0xff] }
   0xf   : > { %v177_v5 = vld [vmem:[%s474_s20 + $0x18] sm:$0xff]  ;;  %v178_v6 = vld [vmem:[%s474_s20 + $0x20] sm:$0xff]  ;;  %v179_v7 = vld [vmem:[%s474_s20 + $0x28] sm:$0xff]  ;;  %v213_v8 = vmul.f32 %v467_v0, %v174_v2  ;;  %v214_v9 = vmul.f32 %v467_v0, %v175_v3  ;;  %v215_v10 = vmul.f32 %v467_v0, %v176_v4 }
  0x10   : > { %v180_v11 = vld [vmem:[%s474_s20 + $0x30] sm:$0xff]  ;;  %v181_v12 = vld [vmem:[%s474_s20 + $0x38] sm:$0xff]  ;;  %v216_v13 = vmul.f32 %v467_v0, %v177_v5  ;;  %v217_v14 = vmul.f32 %v467_v0, %v178_v6  ;;  %v218_v15 = vmul.f32 %v467_v0, %v179_v7  ;;  %v182_v20 = vld [vmem:[%s474_s20 + $0x40] sm:$0xff] }
  0x11   : > { %v252_v16 = vadd.f32 %v479_v1, %v213_v8  ;;  %v253_v17 = vadd.f32 %v479_v1, %v214_v9  ;;  %v254_v18 = vadd.f32 %v479_v1, %v215_v10  ;;  %v219_v19 = vmul.f32 %v467_v0, %v180_v11  ;;  %v183_v21 = vld [vmem:[%s474_s20 + $0x48] sm:$0xff]  ;;  %v184_v22 = vld [vmem:[%s474_s20 + $0x50] sm:$0xff]  ;;  %v185_v27 = vld [vmem:[%s474_s20 + $0x58] sm:$0xff] }
  0x12   : > { %v255_v23 = vadd.f32 %v479_v1, %v216_v13  ;;  %v256_v24 = vadd.f32 %v479_v1, %v217_v14  ;;  %v257_v25 = vadd.f32 %v479_v1, %v218_v15  ;;  %v220_v26 = vmul.f32 %v467_v0, %v181_v12  ;;  %v186_v28 = vld [vmem:[%s474_s20 + $0x60] sm:$0xff]  ;;  %v187_v29 = vld [vmem:[%s474_s20 + $0x68] sm:$0xff]  ;;  %v188_v34 = vld [vmem:[%s474_s20 + $0x70] sm:$0xff] }
  0x13   : > { %v284_v30 = vmax.f32 %v252_v16, 0.0  ;;  %v285_v31 = vmax.f32 %v253_v17, 0.0  ;;  %v286_v32 = vmax.f32 %v254_v18, 0.0  ;;  %v258_v33 = vadd.f32 %v479_v1, %v219_v19  ;;  %v189_v39 = vld [vmem:[%s474_s20 + $0x78] sm:$0xff]  ;;  %v190_v44 = vld [vmem:[%s474_s20 + $0x80] sm:$0xff]  ;;  %v191_v45 = vld [vmem:[%s474_s20 + $0x88] sm:$0xff] }
  0x14   : > { %v287_v35 = vmax.f32 %v255_v23, 0.0  ;;  %v288_v36 = vmax.f32 %v256_v24, 0.0  ;;  %v289_v37 = vmax.f32 %v257_v25, 0.0  ;;  %v259_v38 = vadd.f32 %v479_v1, %v220_v26  ;;  %v192_v46 = vld [vmem:[%s474_s20 + $0x90] sm:$0xff]  ;;  %v193_v47 = vld [vmem:[%s474_s20 + $0x98] sm:$0xff]  ;;  %v194_v48 = vld [vmem:[%s474_s20 + $0xa0] sm:$0xff] }
  0x15   : > { %v290_v40 = vmax.f32 %v258_v33, 0.0  ;;  %v221_v41 = vmul.f32 %v467_v0, %v182_v20  ;;  %v222_v42 = vmul.f32 %v467_v0, %v183_v21  ;;  %v223_v43 = vmul.f32 %v467_v0, %v184_v22  ;;  %v195_v49 = vld [vmem:[%s474_s20 + $0xa8] sm:$0xff]  ;;  %v196_v50 = vld [vmem:[%s474_s20 + $0xb0] sm:$0xff]  ;;  %v197_v51 = vld [vmem:[%s474_s20 + $0xb8] sm:$0xff] }
  0x16   : > { %v532_v52 = vld [vmem:[%s474_s20 + $0xc0] sm:$0xff]  ;;  %v535_v53 = vld [vmem:[%s474_s20 + $0xc8] sm:$0xff]  ;;  %v291_v54 = vmax.f32 %v259_v38, 0.0  ;;  %v224_v55 = vmul.f32 %v467_v0, %v185_v27  ;;  %v225_v56 = vmul.f32 %v467_v0, %v186_v28  ;;  %v226_v57 = vmul.f32 %v467_v0, %v187_v29  ;;  %v541_v58 = vld [vmem:[%s474_s20 + $0xd0] sm:$0xff] }
  0x17   : > { %v544_v59 = vld [vmem:[%s474_s20 + $0xd8] sm:$0xff]  ;;  %v547_v60 = vld [vmem:[%s474_s20 + $0xe0] sm:$0xff]  ;;  %v260_v61 = vadd.f32 %v479_v1, %v221_v41  ;;  %v261_v62 = vadd.f32 %v479_v1, %v222_v42  ;;  %v262_v63 = vadd.f32 %v479_v1, %v223_v43  ;;  %v227_v2 = vmul.f32 %v467_v0, %v188_v34  ;;  %v554_v3 = vld [vmem:[%s474_s20 + $0xe8] sm:$0xff] }
  0x18   : > { %v557_v4 = vld [vmem:[%s474_s20 + $0xf0] sm:$0xff]  ;;  %v560_v5 = vld [vmem:[%s474_s20 + $0xf8] sm:$0xff]  ;;  %v263_v6 = vadd.f32 %v479_v1, %v224_v55  ;;  %v264_v7 = vadd.f32 %v479_v1, %v225_v56  ;;  %v265_v8 = vadd.f32 %v479_v1, %v226_v57  ;;  %v228_v9 = vmul.f32 %v467_v0, %v189_v39 }
  0x19   : > { %316 = vst [vmem:[%s521_s25] sm:$0xff] %v284_v30  ;;  %317 = vst [vmem:[%s521_s25 + $0x8] sm:$0xff] %v285_v31  ;;  %v292_v10 = vmax.f32 %v260_v61, 0.0  ;;  %v293_v11 = vmax.f32 %v261_v62, 0.0  ;;  %v294_v12 = vmax.f32 %v262_v63, 0.0  ;;  %v266_v13 = vadd.f32 %v479_v1, %v227_v2 }
  0x1a   : > { %318 = vst [vmem:[%s521_s25 + $0x10] sm:$0xff] %v286_v32  ;;  %319 = vst [vmem:[%s521_s25 + $0x18] sm:$0xff] %v287_v35  ;;  %v295_v14 = vmax.f32 %v263_v6, 0.0  ;;  %v296_v15 = vmax.f32 %v264_v7, 0.0  ;;  %v297_v16 = vmax.f32 %v265_v8, 0.0  ;;  %v267_v17 = vadd.f32 %v479_v1, %v228_v9 }
  0x1b   : > { %320 = vst [vmem:[%s521_s25 + $0x20] sm:$0xff] %v288_v36  ;;  %321 = vst [vmem:[%s521_s25 + $0x28] sm:$0xff] %v289_v37  ;;  %v298_v18 = vmax.f32 %v266_v13, 0.0  ;;  %v229_v19 = vmul.f32 %v467_v0, %v190_v44  ;;  %v230_v20 = vmul.f32 %v467_v0, %v191_v45  ;;  %v231_v21 = vmul.f32 %v467_v0, %v192_v46 }
  0x1c   : > { %322 = vst [vmem:[%s521_s25 + $0x30] sm:$0xff] %v290_v40  ;;  %323 = vst [vmem:[%s521_s25 + $0x38] sm:$0xff] %v291_v54  ;;  %v299_v22 = vmax.f32 %v267_v17, 0.0  ;;  %v232_v23 = vmul.f32 %v467_v0, %v193_v47  ;;  %v233_v24 = vmul.f32 %v467_v0, %v194_v48  ;;  %v234_v25 = vmul.f32 %v467_v0, %v195_v49 }
  0x1d   : > { %324 = vst [vmem:[%s521_s25 + $0x40] sm:$0xff] %v292_v10  ;;  %325 = vst [vmem:[%s521_s25 + $0x48] sm:$0xff] %v293_v11  ;;  %v268_v26 = vadd.f32 %v479_v1, %v229_v19  ;;  %v269_v27 = vadd.f32 %v479_v1, %v230_v20  ;;  %v270_v28 = vadd.f32 %v479_v1, %v231_v21 }
  0x1e   : > { %326 = vst [vmem:[%s521_s25 + $0x50] sm:$0xff] %v294_v12  ;;  %327 = vst [vmem:[%s521_s25 + $0x58] sm:$0xff] %v295_v14  ;;  %v235_v29 = vmul.f32 %v467_v0, %v196_v50  ;;  %v271_v30 = vadd.f32 %v479_v1, %v232_v23  ;;  %v272_v31 = vadd.f32 %v479_v1, %v233_v24 }
  0x1f   : > { %328 = vst [vmem:[%s521_s25 + $0x60] sm:$0xff] %v296_v15  ;;  %329 = vst [vmem:[%s521_s25 + $0x68] sm:$0xff] %v297_v16  ;;  %v273_v32 = vadd.f32 %v479_v1, %v234_v25  ;;  %v236_v33 = vmul.f32 %v467_v0, %v197_v51  ;;  %v300_v34 = vmax.f32 %v268_v26, 0.0  ;;  %v301_v35 = vmax.f32 %v269_v27, 0.0 }
  0x20   : > { %330 = vst [vmem:[%s521_s25 + $0x70] sm:$0xff] %v298_v18  ;;  %331 = vst [vmem:[%s521_s25 + $0x78] sm:$0xff] %v299_v22  ;;  %v302_v36 = vmax.f32 %v270_v28, 0.0  ;;  %v274_v37 = vadd.f32 %v479_v1, %v235_v29  ;;  %v303_v38 = vmax.f32 %v271_v30, 0.0  ;;  %v304_v39 = vmax.f32 %v272_v31, 0.0 }
  0x21   : > { %v305_v40 = vmax.f32 %v273_v32, 0.0  ;;  %v275_v41 = vadd.f32 %v479_v1, %v236_v33  ;;  %332 = vst [vmem:[%s521_s25 + $0x80] sm:$0xff] %v300_v34  ;;  %333 = vst [vmem:[%s521_s25 + $0x88] sm:$0xff] %v301_v35  ;;  %v237_v43 = vmul.f32 %v467_v0, %v532_v52  ;;  %v238_v44 = vmul.f32 %v467_v0, %v535_v53 }
  0x22   : > { %334 = vst [vmem:[%s521_s25 + $0x90] sm:$0xff] %v302_v36  ;;  %v306_v42 = vmax.f32 %v274_v37, 0.0  ;;  %v239_v45 = vmul.f32 %v467_v0, %v541_v58  ;;  %335 = vst [vmem:[%s521_s25 + $0x98] sm:$0xff] %v303_v38  ;;  %v240_v47 = vmul.f32 %v467_v0, %v544_v59  ;;  %v241_v48 = vmul.f32 %v467_v0, %v547_v60 }
  0x23   : > { %336 = vst [vmem:[%s521_s25 + $0xa0] sm:$0xff] %v304_v39  ;;  %337 = vst [vmem:[%s521_s25 + $0xa8] sm:$0xff] %v305_v40  ;;  %v307_v46 = vmax.f32 %v275_v41, 0.0  ;;  %v242_v49 = vmul.f32 %v467_v0, %v554_v3  ;;  %v276_v50 = vadd.f32 %v479_v1, %v237_v43  ;;  %v277_v51 = vadd.f32 %v479_v1, %v238_v44 }
  0x24   : > { %338 = vst [vmem:[%s521_s25 + $0xb0] sm:$0xff] %v306_v42  ;;  %v278_v52 = vadd.f32 %v479_v1, %v239_v45  ;;  %v243_v53 = vmul.f32 %v467_v0, %v557_v4  ;;  %v279_v54 = vadd.f32 %v479_v1, %v240_v47  ;;  %v280_v55 = vadd.f32 %v479_v1, %v241_v48 }
  0x25   : > { %339 = vst [vmem:[%s521_s25 + $0xb8] sm:$0xff] %v307_v46  ;;  %v281_v56 = vadd.f32 %v479_v1, %v242_v49  ;;  %v244_v57 = vmul.f32 %v467_v0, %v560_v5  ;;  %v308_v58 = vmax.f32 %v276_v50, 0.0  ;;  %v309_v59 = vmax.f32 %v277_v51, 0.0 }
  0x26   : > { %v310_v60 = vmax.f32 %v278_v52, 0.0  ;;  %v282_v61 = vadd.f32 %v479_v1, %v243_v53  ;;  %v311_v62 = vmax.f32 %v279_v54, 0.0  ;;  %v312_v63 = vmax.f32 %v280_v55, 0.0 }
  0x27   : > { %v313_v2 = vmax.f32 %v281_v56, 0.0  ;;  %v283_v3 = vadd.f32 %v479_v1, %v244_v57  ;;  %340 = vst [vmem:[%s521_s25 + $0xc0] sm:$0xff] %v308_v58  ;;  %341 = vst [vmem:[%s521_s25 + $0xc8] sm:$0xff] %v309_v59 }
  0x28   : > { %342 = vst [vmem:[%s521_s25 + $0xd0] sm:$0xff] %v310_v60  ;;  %v314_v4 = vmax.f32 %v282_v61, 0.0  ;;  %343 = vst [vmem:[%s521_s25 + $0xd8] sm:$0xff] %v311_v62 }
  0x29   : > { %344 = vst [vmem:[%s521_s25 + $0xe0] sm:$0xff] %v312_v63  ;;  %345 = vst [vmem:[%s521_s25 + $0xe8] sm:$0xff] %v313_v2  ;;  %v315_v0 = vmax.f32 %v283_v3, 0.0 }
  0x2a   : > { %346 = vst [vmem:[%s521_s25 + $0xf0] sm:$0xff] %v314_v4 }
  0x2b   : > { %347 = vst [vmem:[%s521_s25 + $0xf8] sm:$0xff] %v315_v0 }
  0x2c PF: > { %s13_s12 = sadd.s32 1, %s431_s12  }
  0x2d   : > { %p10_p4 = scmp.ge.s32.totalorder %s13_s12, 4  }
  0x2f   :  { %12 = sbr.rel (!%p10_p4) target bundleno = 1 (0x1), region = 62 }

// kernel: basic_conv_forward.2
= control target key start
LH: loop header
LB: loop body
LE: loop exit
PB: predicated region body
PF: predicated region fallthrough
CT: control target
= control target key end

     0   :  { %s1256_s12 = smov 0   ;;  %s1258_s13 = smov 0   ;;  %s1467_s0 = inlined_call_operand.vmem [shape: bf16[512,128], index: 0, kind: input, shape index: {}]   ;;  %s1468_s1 = inlined_call_operand.vmem [shape: bf16[128,128], index: 1, kind: input, shape index: {}]   ;;  %s1469_s2 = inlined_call_operand.vmem [shape: f32[512,128], index: 2, kind: output, shape index: {0}]   ;;  %s1470_s3 = inlined_call_operand.vmem [shape: f32[16,128], index: 3, kind: output, shape index: {1}]  }
   0x1   :  { %s1260_s14 = smov 0  }
   0x2 LB: > { %s33_s15 = sadd.s32 1, %s1230_s13  ;;  %p1043_p0 = scmp.ge.s32.totalorder %s1234_s14, 1  ;;  %s1234_s14 = sphi %s1260_s14, %s14_s14   ;;  %s1230_s13 = sphi %s1258_s13, %s1472_s13   ;;  %s1226_s12 = sphi %s1256_s12, %s1471_s12  }
   0x3   : > { %p35_p1 = scmp.ge.s32.totalorder %s33_s15, 2  ;;  %p185_p2 = scmp.lt.s32.totalorder %s1234_s14, 3 }
   0x5   : > { %s1474_s15 = smov (%p35_p1, %s33_s15), 0  ;;  %p186_p3 = pnand %p1043_p0, %p185_p2 }
   0x6   : > { %s1044_s18 = sshll.u32 (!%p186_p3), %s1226_s12, 5  ;;  %p257_p5 = scmp.lt.s32.totalorder (!%p186_p3), %s1226_s12, 1 }
   0x7   : > { %189 = sbr.rel (%p186_p3) target bundleno = 323 (0x143), region = 28  ;;  %p231_p4 = scmp.lt.s32.totalorder (!%p186_p3), %s1044_s18, 63 }
   0xc   : > { %v1188_v0 = vld [vmem:[%s1468_s1 + $0x38] sm:$0xff]   ;;  %v1189_v1 = vld [vmem:[%s1468_s1 + $0x30] sm:$0xff]   ;;  %s1476_s18 = smov (!%p231_p4, %s1044_s18), 63  ;;  %v1190_v2 = vld [vmem:[%s1468_s1 + $0x28] sm:$0xff]   ;;  %s1478_s12 = smov (!%p257_p5, %s1226_s12), 1 }
   0xd   : > { %1099 = vmatprep.subr.bf16.mxu0 %v1188_v0  ;;  %1147 = vmatprep.subr.bf16.mxu1 %v1188_v0  ;;  %s1045_s23 = sshll.u32 %s1476_s18, 2  ;;  %v1191_v3 = vld [vmem:[%s1468_s1 + $0x20] sm:$0xff]   ;;  %v1192_v5 = vld [vmem:[%s1468_s1 + $0x18] sm:$0xff]   ;;  %v1193_v6 = vld [vmem:[%s1468_s1 + $0x10] sm:$0xff]   ;;  %s1047_s10 = sshll.u32 %s1476_s18, 3 }
   0xe   : > { %1100 = vmatpush3.bf16.msra.mxu0 %v1188_v0  ;;  %1155 = vmatpush3.bf16.msra.mxu1 %v1188_v0  ;;  %s1292_s26 = scalar_lea.vmem %s1467_s0, %s1045_s23  ;;  %v1194_v8 = vld [vmem:[%s1468_s1 + $0x8] sm:$0xff]   ;;  %v1195_v9 = vld [vmem:[%s1468_s1] sm:$0xff]   ;;  %s1329_s17 = scalar_lea.vmem %s1469_s2, %s1047_s10 }
   0xf   : > { %1101 = vmatprep.subr.bf16.mxu0 %v1189_v1  ;;  %1148 = vmatprep.subr.bf16.mxu1 %v1189_v1  ;;  %v1196_v4 = vld [vmem:[%s1292_s26] sm:$0xff]   ;;  %v1197_v10 = vld [vmem:[%s1292_s26 + $0x8] sm:$0xff]   ;;  %v1198_v12 = vld [vmem:[%s1292_s26 + $0x10] sm:$0xff]   ;;  %s1048_s18 = sshll.u32 %s1478_s12, 3 }
  0x10   : > { %1115 = vmatprep.mubr.bf16.mxu0 %v1196_v4  ;;  %v1204_v7 = vld [vmem:[%s1292_s26 + $0x40] sm:$0xff]   ;;  %v1205_v11 = vld [vmem:[%s1292_s26 + $0x48] sm:$0xff]   ;;  %v1206_v13 = vld [vmem:[%s1292_s26 + $0x50] sm:$0xff]   ;;  %s263_s21 = scalar_lea.vmem %s1470_s3, %s1048_s18 }
  0x11   : > { %1131 = vmatprep.mubr.bf16.mxu1 %v1204_v7  ;;  %v1199_v14 = vld [vmem:[%s1292_s26 + $0x18] sm:$0xff]   ;;  %v1200_v16 = vld [vmem:[%s1292_s26 + $0x20] sm:$0xff]   ;;  %v1201_v18 = vld [vmem:[%s1292_s26 + $0x28] sm:$0xff]  }
  0x12   : > { %1102 = vmatpush3.bf16.msra.mxu0 %v1189_v1  ;;  %1156 = vmatpush3.bf16.msra.mxu1 %v1189_v1  ;;  %v1207_v15 = vld [vmem:[%s1292_s26 + $0x58] sm:$0xff]   ;;  %v1208_v17 = vld [vmem:[%s1292_s26 + $0x60] sm:$0xff]   ;;  %v1209_v19 = vld [vmem:[%s1292_s26 + $0x68] sm:$0xff]  }
  0x13   : > { %1103 = vmatprep.subr.bf16.mxu0 %v1190_v2  ;;  %1149 = vmatprep.subr.bf16.mxu1 %v1190_v2  ;;  %v1202_v20 = vld [vmem:[%s1292_s26 + $0x30] sm:$0xff]   ;;  %v1203_v22 = vld [vmem:[%s1292_s26 + $0x38] sm:$0xff]  }
  0x14   : > { %v1210_v21 = vld [vmem:[%s1292_s26 + $0x70] sm:$0xff]   ;;  %v1211_v23 = vld [vmem:[%s1292_s26 + $0x78] sm:$0xff]  }
  0x16   : > { %1104 = vmatpush3.bf16.msra.mxu0 %v1190_v2  ;;  %1157 = vmatpush3.bf16.msra.mxu1 %v1190_v2 }
  0x17   : > { %1105 = vmatprep.subr.bf16.mxu0 %v1191_v3  ;;  %1150 = vmatprep.subr.bf16.mxu1 %v1191_v3 }
  0x1a   : > { %1106 = vmatpush3.bf16.msra.mxu0 %v1191_v3  ;;  %1158 = vmatpush3.bf16.msra.mxu1 %v1191_v3 }
  0x1b   : > { %1107 = vmatprep.subr.bf16.mxu0 %v1192_v5  ;;  %1151 = vmatprep.subr.bf16.mxu1 %v1192_v5 }
  0x1e   : > { %1108 = vmatpush3.bf16.msra.mxu0 %v1192_v5  ;;  %1159 = vmatpush3.bf16.msra.mxu1 %v1192_v5 }
  0x1f   : > { %1109 = vmatprep.subr.bf16.mxu0 %v1193_v6  ;;  %1152 = vmatprep.subr.bf16.mxu1 %v1193_v6 }
  0x22   : > { %1110 = vmatpush3.bf16.msra.mxu0 %v1193_v6  ;;  %1160 = vmatpush3.bf16.msra.mxu1 %v1193_v6 }
  0x23   : > { %1111 = vmatprep.subr.bf16.mxu0 %v1194_v8  ;;  %1153 = vmatprep.subr.bf16.mxu1 %v1194_v8 }
  0x26   : > { %1112 = vmatpush3.bf16.msra.mxu0 %v1194_v8  ;;  %1161 = vmatpush3.bf16.msra.mxu1 %v1194_v8 }
  0x27   : > { %1113 = vmatprep.subr.bf16.mxu0 %v1195_v9  ;;  %1154 = vmatprep.subr.bf16.mxu1 %v1195_v9 }
  0x2a   : > { %1114 = vmatpush3.bf16.msra.mxu0 %v1195_v9  ;;  %1162 = vmatpush3.bf16.msra.mxu1 %v1195_v9 }
  0x2d   : > { %1116 = vmatmul.mubr.bf16.vlgmr.msra.gmra.mxu0 %v1197_v10  ;;  %1132 = vmatmul.mubr.bf16.vlgmr.msra.gmra.mxu1 %v1205_v11 }
  0x2e   : > { %1119 = vmatprep.mubr.bf16.mxu0 %v1198_v12  ;;  %1135 = vmatprep.mubr.bf16.mxu1 %v1206_v13 }
  0x35   : > { %1120 = vmatmul.mubr.bf16.gmra.mxu0 %v1199_v14  ;;  %1136 = vmatmul.mubr.bf16.gmra.mxu1 %v1207_v15 }
  0x36   : > { %1123 = vmatprep.mubr.bf16.mxu0 %v1200_v16  ;;  %1139 = vmatprep.mubr.bf16.mxu1 %v1208_v17 }
  0x3d   : > { %1124 = vmatmul.mubr.bf16.gmra.mxu0 %v1201_v18  ;;  %1140 = vmatmul.mubr.bf16.gmra.mxu1 %v1209_v19 }
  0x3e   : > { %1127 = vmatprep.mubr.bf16.mxu0 %v1202_v20  ;;  %1143 = vmatprep.mubr.bf16.mxu1 %v1210_v21 }
  0x45   : > { %1128 = vmatmul.mubr.bf16.gmra.mxu0 %v1203_v22  ;;  %1144 = vmatmul.mubr.bf16.gmra.mxu1 %v1211_v23 }
  0xed   : > { %v1117_v24 = vpop.f32.mrf.mxu0  ;;  %v1331_v25 = vpop.f32.mrf.mxu1 }
  0xee   : > { %720 = vst [vmem:[%s1329_s17 + $0x10] sm:$0xff] %v1117_v24  ;;  %736 = vst [vmem:[%s1329_s17 + $0x90] sm:$0xff] %v1331_v25  ;;  %v824_v39 = vmul.f32 %v1117_v24, %v1117_v24 }
  0xef   : > { %v559_v26 = vpop.f32.mrf.mxu0  ;;  %v1333_v27 = vpop.f32.mrf.mxu1 }
  0xf0   : > { %718 = vst [vmem:[%s1329_s17] sm:$0xff] %v559_v26  ;;  %734 = vst [vmem:[%s1329_s17 + $0x80] sm:$0xff] %v1333_v27  ;;  %v822_v34 = vmul.f32 %v559_v26, %v559_v26 }
  0xf1   : > { %v1118_v28 = vpop.f32.mrf.mxu0  ;;  %v1338_v29 = vpop.f32.mrf.mxu1 }
  0xf2   : > { %721 = vst [vmem:[%s1329_s17 + $0x18] sm:$0xff] %v1118_v28  ;;  %737 = vst [vmem:[%s1329_s17 + $0x98] sm:$0xff] %v1338_v29  ;;  %v825_v44 = vmul.f32 %v1118_v28, %v1118_v28 }
  0xf3   : > { %v562_v30 = vpop.f32.mrf.mxu0  ;;  %v1343_v31 = vpop.f32.mrf.mxu1 }
  0xf4   : > { %719 = vst [vmem:[%s1329_s17 + $0x8] sm:$0xff] %v562_v30  ;;  %v785_v35 = vadd.f32 %v562_v30, %v559_v26  ;;  %v823_v36 = vmul.f32 %v562_v30, %v562_v30  ;;  %735 = vst [vmem:[%s1329_s17 + $0x88] sm:$0xff] %v1343_v31 }
  0xf5   : > { %v1121_v32 = vpop.f32.mrf.mxu0  ;;  %v1348_v33 = vpop.f32.mrf.mxu1 }
  0xf6   : > { %v786_v40 = vadd.f32 %v1117_v24, %v785_v35  ;;  %v854_v41 = vadd.f32 %v823_v36, %v822_v34  ;;  %724 = vst [vmem:[%s1329_s17 + $0x30] sm:$0xff] %v1121_v32  ;;  %740 = vst [vmem:[%s1329_s17 + $0xb0] sm:$0xff] %v1348_v33  ;;  %v828_v59 = vmul.f32 %v1121_v32, %v1121_v32 }
  0xf7   : > { %v575_v37 = vpop.f32.mrf.mxu0  ;;  %v1353_v38 = vpop.f32.mrf.mxu1 }
  0xf8   : > { %v855_v45 = vadd.f32 %v854_v41, %v824_v39  ;;  %722 = vst [vmem:[%s1329_s17 + $0x20] sm:$0xff] %v575_v37  ;;  %v787_v46 = vadd.f32 %v1118_v28, %v786_v40  ;;  %738 = vst [vmem:[%s1329_s17 + $0xa0] sm:$0xff] %v1353_v38  ;;  %v826_v50 = vmul.f32 %v575_v37, %v575_v37 }
  0xf9   : > { %v1122_v42 = vpop.f32.mrf.mxu0  ;;  %v1358_v43 = vpop.f32.mrf.mxu1 }
  0xfa   : > { %v788_v49 = vadd.f32 %v787_v46, %v575_v37  ;;  %v856_v51 = vadd.f32 %v855_v45, %v825_v44  ;;  %725 = vst [vmem:[%s1329_s17 + $0x38] sm:$0xff] %v1122_v42  ;;  %741 = vst [vmem:[%s1329_s17 + $0xb8] sm:$0xff] %v1358_v43  ;;  %v829_v0 = vmul.f32 %v1122_v42, %v1122_v42 }
  0xfb   : > { %v578_v47 = vpop.f32.mrf.mxu0  ;;  %v1363_v48 = vpop.f32.mrf.mxu1  ;;  %v838_v44 = vmul.f32 %v1333_v27, %v1333_v27 }
  0xfc   : > { %v857_v54 = vadd.f32 %v856_v51, %v826_v50  ;;  %723 = vst [vmem:[%s1329_s17 + $0x28] sm:$0xff] %v578_v47  ;;  %v789_v55 = vadd.f32 %v788_v49, %v578_v47  ;;  %v827_v56 = vmul.f32 %v578_v47, %v578_v47  ;;  %739 = vst [vmem:[%s1329_s17 + $0xa8] sm:$0xff] %v1363_v48 }
  0xfd   : > { %v1125_v52 = vpop.f32.mrf.mxu0  ;;  %v1368_v53 = vpop.f32.mrf.mxu1  ;;  %v839_v49 = vmul.f32 %v1343_v31, %v1343_v31  ;;  %v840_v51 = vmul.f32 %v1331_v25, %v1331_v25 }
  0xfe   : > { %v790_v60 = vadd.f32 %v1121_v32, %v789_v55  ;;  %v858_v61 = vadd.f32 %v857_v54, %v827_v56  ;;  %728 = vst [vmem:[%s1329_s17 + $0x50] sm:$0xff] %v1125_v52  ;;  %744 = vst [vmem:[%s1329_s17 + $0xd0] sm:$0xff] %v1368_v53  ;;  %v832_v15 = vmul.f32 %v1125_v52, %v1125_v52 }
  0xff   : > { %v591_v57 = vpop.f32.mrf.mxu0  ;;  %v1373_v58 = vpop.f32.mrf.mxu1  ;;  %v841_v55 = vmul.f32 %v1338_v29, %v1338_v29 }
 0x100   : > { %v859_v1 = vadd.f32 %v858_v61, %v828_v59  ;;  %726 = vst [vmem:[%s1329_s17 + $0x40] sm:$0xff] %v591_v57  ;;  %v791_v2 = vadd.f32 %v1122_v42, %v790_v60  ;;  %742 = vst [vmem:[%s1329_s17 + $0xc0] sm:$0xff] %v1373_v58  ;;  %v830_v6 = vmul.f32 %v591_v57, %v591_v57 }
 0x101   : > { %v1126_v62 = vpop.f32.mrf.mxu0  ;;  %v1378_v63 = vpop.f32.mrf.mxu1  ;;  %v842_v59 = vmul.f32 %v1353_v38, %v1353_v38 }
 0x102   : > { %v792_v5 = vadd.f32 %v791_v2, %v591_v57  ;;  %v860_v7 = vadd.f32 %v859_v1, %v829_v0  ;;  %729 = vst [vmem:[%s1329_s17 + $0x58] sm:$0xff] %v1126_v62  ;;  %745 = vst [vmem:[%s1329_s17 + $0xd8] sm:$0xff] %v1378_v63  ;;  %v833_v20 = vmul.f32 %v1126_v62, %v1126_v62 }
 0x103   : > { %v594_v3 = vpop.f32.mrf.mxu0  ;;  %v1383_v4 = vpop.f32.mrf.mxu1 }
 0x104   : > { %v861_v10 = vadd.f32 %v860_v7, %v830_v6  ;;  %727 = vst [vmem:[%s1329_s17 + $0x48] sm:$0xff] %v594_v3  ;;  %v793_v11 = vadd.f32 %v792_v5, %v594_v3  ;;  %v831_v12 = vmul.f32 %v594_v3, %v594_v3  ;;  %743 = vst [vmem:[%s1329_s17 + $0xc8] sm:$0xff] %v1383_v4 }
 0x105   : > { %v1129_v8 = vpop.f32.mrf.mxu0  ;;  %v1388_v9 = vpop.f32.mrf.mxu1  ;;  %v846_v5 = vmul.f32 %v1373_v58, %v1373_v58 }
 0x106   : > { %v794_v16 = vadd.f32 %v1125_v52, %v793_v11  ;;  %v862_v17 = vadd.f32 %v861_v10, %v831_v12  ;;  %732 = vst [vmem:[%s1329_s17 + $0x70] sm:$0xff] %v1129_v8  ;;  %748 = vst [vmem:[%s1329_s17 + $0xf0] sm:$0xff] %v1388_v9  ;;  %v836_v36 = vmul.f32 %v1129_v8, %v1129_v8 }
 0x107   : > { %v607_v13 = vpop.f32.mrf.mxu0  ;;  %v1393_v14 = vpop.f32.mrf.mxu1 }
 0x108   : > { %v863_v21 = vadd.f32 %v862_v17, %v832_v15  ;;  %730 = vst [vmem:[%s1329_s17 + $0x60] sm:$0xff] %v607_v13  ;;  %v795_v22 = vadd.f32 %v1126_v62, %v794_v16  ;;  %746 = vst [vmem:[%s1329_s17 + $0xe0] sm:$0xff] %v1393_v14  ;;  %v834_v28 = vmul.f32 %v607_v13, %v607_v13 }
 0x109   : > { %v1130_v18 = vpop.f32.mrf.mxu0  ;;  %v1398_v19 = vpop.f32.mrf.mxu1  ;;  %v843_v62 = vmul.f32 %v1363_v48, %v1363_v48  ;;  %v850_v15 = vmul.f32 %v1393_v14, %v1393_v14 }
 0x10a   : > { %v796_v26 = vadd.f32 %v795_v22, %v607_v13  ;;  %v864_v30 = vadd.f32 %v863_v21, %v833_v20  ;;  %733 = vst [vmem:[%s1329_s17 + $0x78] sm:$0xff] %v1130_v18  ;;  %749 = vst [vmem:[%s1329_s17 + $0xf8] sm:$0xff] %v1398_v19  ;;  %v837_v40 = vmul.f32 %v1130_v18, %v1130_v18 }
 0x10b   : > { %v610_v23 = vpop.f32.mrf.mxu0  ;;  %v674_v24 = vpop.f32.mrf.mxu1  ;;  %v853_v22 = vmul.f32 %v1398_v19, %v1398_v19 }
 0x10c   : > { %v865_v32 = vadd.f32 %v864_v30, %v834_v28  ;;  %731 = vst [vmem:[%s1329_s17 + $0x68] sm:$0xff] %v610_v23  ;;  %v797_v34 = vadd.f32 %v796_v26, %v610_v23  ;;  %v835_v35 = vmul.f32 %v610_v23, %v610_v23  ;;  %747 = vst [vmem:[%s1329_s17 + $0xe8] sm:$0xff] %v674_v24 }
 0x10e   : > { %v798_v37 = vadd.f32 %v1129_v8, %v797_v34  ;;  %v866_v39 = vadd.f32 %v865_v32, %v835_v35  ;;  %v847_v8 = vmul.f32 %v1383_v4, %v1383_v4  ;;  %v891_v32 = vlaneseq }
 0x110   : > { %v867_v41 = vadd.f32 %v866_v39, %v836_v36  ;;  %v799_v42 = vadd.f32 %v1130_v18, %v798_v37  ;;  %v851_v18 = vmul.f32 %v674_v24, %v674_v24  ;;  %v892_v37 = vshrl.u32 %v891_v32, 7 }
 0x112   : > { %v800_v45 = vadd.f32 %v799_v42, %v1333_v27  ;;  %v868_v46 = vadd.f32 %v867_v41, %v837_v40  ;;  %vm894_vm0 = vcmp.eq.s32.totalorder %v892_v37, 1  ;;  %vm893_vm1 = vcmp.eq.s32.totalorder %v892_v37, 0 }
 0x114   : > { %v801_v47 = vadd.f32 %v800_v45, %v1343_v31  ;;  %v869_v50 = vadd.f32 %v868_v46, %v838_v44 }
 0x116   : > { %v802_v52 = vadd.f32 %v1331_v25, %v801_v47  ;;  %v870_v54 = vadd.f32 %v869_v50, %v839_v49  ;;  %v844_v25 = vmul.f32 %v1348_v33, %v1348_v33 }
 0x118   : > { %v871_v56 = vadd.f32 %v870_v54, %v840_v51  ;;  %v803_v57 = vadd.f32 %v1338_v29, %v802_v52  ;;  %v845_v29 = vmul.f32 %v1358_v43, %v1358_v43 }
 0x11a   : > { %v804_v27 = vadd.f32 %v803_v57, %v1353_v38  ;;  %v872_v60 = vadd.f32 %v871_v56, %v841_v55 }
 0x11c   : > { %v873_v31 = vadd.f32 %v872_v60, %v842_v59  ;;  %v805_v61 = vadd.f32 %v804_v27, %v1363_v48 }
 0x11e   : > { %v806_v0 = vadd.f32 %v1348_v33, %v805_v61  ;;  %v874_v1 = vadd.f32 %v873_v31, %v843_v62  ;;  %v848_v33 = vmul.f32 %v1368_v53, %v1368_v53 }
 0x120   : > { %v875_v2 = vadd.f32 %v874_v1, %v844_v25  ;;  %v807_v3 = vadd.f32 %v1358_v43, %v806_v0  ;;  %v849_v43 = vmul.f32 %v1378_v63, %v1378_v63 }
 0x122   : > { %v808_v38 = vadd.f32 %v807_v3, %v1373_v58  ;;  %v876_v6 = vadd.f32 %v875_v2, %v845_v29 }
 0x124   : > { %v877_v7 = vadd.f32 %v876_v6, %v846_v5  ;;  %v809_v48 = vadd.f32 %v808_v38, %v1383_v4 }
 0x126   : > { %v810_v10 = vadd.f32 %v1368_v53, %v809_v48  ;;  %v878_v11 = vadd.f32 %v877_v7, %v847_v8  ;;  %v852_v53 = vmul.f32 %v1388_v9, %v1388_v9 }
 0x128   : > { %v879_v12 = vadd.f32 %v878_v11, %v848_v33  ;;  %v811_v58 = vadd.f32 %v1378_v63, %v810_v10 }
 0x12a   : > { %v812_v13 = vadd.f32 %v811_v58, %v1393_v14  ;;  %v880_v16 = vadd.f32 %v879_v12, %v849_v43 }
 0x12c   : > { %v881_v4 = vadd.f32 %v880_v16, %v850_v15  ;;  %v813_v17 = vadd.f32 %v812_v13, %v674_v24 }
 0x12e   : > { %v814_v20 = vadd.f32 %v1388_v9, %v813_v17  ;;  %v882_v21 = vadd.f32 %v881_v4, %v851_v18 }
 0x130   : > { %v815_v63 = vadd.f32 %v1398_v19, %v814_v20  ;;  %v883_v23 = vadd.f32 %v882_v21, %v852_v53 }
 0x132   : > { %v816_v26 = vrot.slane %v815_v63, 4  ;;  %v884_v28 = vadd.f32 %v883_v23, %v853_v22 }
 0x134   : > { %v817_v14 = vadd.f32 %v816_v26, %v815_v63  ;;  %v885_v30 = vrot.slane %v884_v28, 4 }
 0x136   : > { %v818_v34 = vrot.slane %v817_v14, 2  ;;  %v886_v24 = vadd.f32 %v885_v30, %v884_v28 }
 0x138   : > { %v819_v35 = vadd.f32 %v818_v34, %v817_v14  ;;  %v887_v36 = vrot.slane %v886_v24, 2 }
 0x13a   : > { %v888_v9 = vadd.f32 %v887_v36, %v886_v24  ;;  %v820_v39 = vrot.slane %v819_v35, 1 }
 0x13c   : > { %v889_v40 = vrot.slane %v888_v9, 1  ;;  %v821_v19 = vadd.f32 %v820_v39, %v819_v35 }
 0x13e   : > { %v890_v41 = vadd.f32 %v889_v40, %v888_v9 }
 0x140   : > { %v895_v42 = vsel %vm894_vm0, %v890_v41, 0.0 }
 0x141   : > { %v896_v44 = vsel %vm893_vm1, %v821_v19, %v895_v42 }
 0x142   : > { %897 = vst [vmem:[%s263_s21] sm:$0xff] %v896_v44 }
 0x143 PF: > { %s14_s14 = sadd.s32 1, %s1234_s14   ;;  %s1471_s12 = smov %s1230_s13 }
 0x144   : > { %p11_p6 = scmp.ge.s32.totalorder %s14_s14, 4   ;;  %s1472_s13 = smov %s1474_s15 }
 0x146   :  { %13 = sbr.rel (!%p11_p6) target bundleno = 2 (0x2), region = 81 }

</bundles_post_ra>
